<compile_context>
chip_gen: v5e
topology: v5e:2x2
jax: 0.10.0
libtpu: 0.0.40
codegen_flags: <defaults>
</compile_context>

<pallas_src>
import jax
import jax.numpy as jnp
from jax.experimental import pallas as pl
from jax.experimental.pallas import tpu as pltpu

# Small, module-consistent hyperparameters.
N_HEAD = 2
D_MODEL = 32
D_HEAD = 16
D_INNER = 64
SEQ = 8
BATCH = 2
EPS = 1e-5  # nn.LayerNorm default eps

HDH = N_HEAD * D_HEAD


def _layer_norm(x, gamma, beta):
    mu = jnp.mean(x, axis=-1, keepdims=True)
    var = jnp.mean((x - mu) ** 2, axis=-1, keepdims=True)
    return (x - mu) * jax.lax.rsqrt(var + EPS) * gamma + beta


# ---------------------------------------------------------------------------
# Fused kernel: QKV proj -> masked MHA -> residual + LN1 -> LN2 -> FF.
# Operates on all N = S*B tokens at once; row index = s*B + b.
# ---------------------------------------------------------------------------
def decoder_layer_kernel(x_ref, wqkv_ref, wo_ref,
                         g1_ref, b1_ref, g2_ref, b2_ref,
                         w1_ref, fb1_ref, w2_ref, fb2_ref, o_ref):
    x = x_ref[...]                                                 # [N, D]
    N = x.shape[0]

    # Single fused QKV projection over all tokens.
    qkv = jnp.dot(x, wqkv_ref[...], preferred_element_type=jnp.float32)  # [N, 3*H*dh]

    # Same-batch mask: tokens are interleaved (row = s*B + b), so two rows
    # belong to the same batch element iff (row % B) == (col % B).
    rows = jax.lax.broadcasted_iota(jnp.int32, (N, N), 0)
    cols = jax.lax.broadcasted_iota(jnp.int32, (N, N), 1)
    same_batch = (rows % BATCH) == (cols % BATCH)

    scale = 1.0 / (D_HEAD ** 0.5)
    attn_out = jnp.zeros((N, D_MODEL), jnp.float32)

    for h in range(N_HEAD):  # static unroll over heads (no concatenate)
        qh = qkv[:, h * D_HEAD:(h + 1) * D_HEAD]                   # [N, dh]
        kh = qkv[:, HDH + h * D_HEAD:HDH + (h + 1) * D_HEAD]       # [N, dh]
        vh = qkv[:, 2 * HDH + h * D_HEAD:2 * HDH + (h + 1) * D_HEAD]

        # q k^T without a materialized transpose: contract last dims.
        score = jax.lax.dot_general(
            qh, kh, (((1,), (1,)), ((), ())),
            preferred_element_type=jnp.float32) * scale            # [N, N]
        score = jnp.where(same_batch, score, -1e30)
        score = score - jnp.max(score, axis=-1, keepdims=True)
        p = jnp.exp(score)
        # Divide -> EUP reciprocal (approx); frees VALU slots.
        p = p * pl.reciprocal(jnp.sum(p, axis=-1, keepdims=True), approx=True)

        oh = jnp.dot(p, vh, preferred_element_type=jnp.float32)    # [N, dh]
        # Accumulate head contribution through its slice of W_o (no concat).
        attn_out = attn_out + jnp.dot(
            oh, wo_ref[h * D_HEAD:(h + 1) * D_HEAD, :],
            preferred_element_type=jnp.float32)                    # [N, D]

    # MultiHeadAttn epilogue: residual + post-LayerNorm.
    h1 = _layer_norm(x + attn_out, g1_ref[...], b1_ref[...])       # [N, D]

    # PositionwiseFF (no residual, as in the module).
    xn = _layer_norm(h1, g2_ref[...], b2_ref[...])
    hid = jnp.dot(xn, w1_ref[...], preferred_element_type=jnp.float32) + fb1_ref[...]
    hid = jnp.maximum(hid, 0.0)
    o_ref[...] = jnp.dot(hid, w2_ref[...],
                         preferred_element_type=jnp.float32) + fb2_ref[...]


def decoder_layer(dec_inp, params):
    """dec_inp: [S, B, D] float32 -> [S, B, D] float32."""
    S, B, D = dec_inp.shape
    N = S * B

    # Free (contiguous) flatten — no HBM-round-trip transpose.
    x2d = dec_inp.reshape(N, D)

    # Advisory cost estimate so XLA can overlap surrounding ops.
    flops = (2 * N * D * 3 * HDH                       # QKV projection
             + N_HEAD * (4 * N * N * D_HEAD            # scores + p@v per head
                         + 2 * N * D_HEAD * D)         # per-head W_o
             + 2 * N * D * D_INNER + 2 * N * D_INNER * D)  # FF
    transcendentals = N_HEAD * N * N + 4 * N           # exp + rsqrt + reciprocal
    bytes_accessed = 4 * (2 * N * D + D * 3 * HDH + HDH * D
                          + D * D_INNER + D_INNER * D + 4 * D + D_INNER)
    cost = pl.CostEstimate(flops=flops, transcendentals=transcendentals,
                           bytes_accessed=bytes_accessed)

    out = pl.pallas_call(
        decoder_layer_kernel,
        out_shape=jax.ShapeDtypeStruct((N, D), jnp.float32),
        grid=(1,),
        in_specs=[
            pl.BlockSpec((N, D), lambda i: (0, 0)),            # tokens
            pl.BlockSpec((D, 3 * HDH), lambda i: (0, 0)),      # fused W_qkv
            pl.BlockSpec((HDH, D), lambda i: (0, 0)),          # W_o
            pl.BlockSpec((1, D), lambda i: (0, 0)),            # ln1 gamma
            pl.BlockSpec((1, D), lambda i: (0, 0)),            # ln1 beta
            pl.BlockSpec((1, D), lambda i: (0, 0)),            # ln2 gamma
            pl.BlockSpec((1, D), lambda i: (0, 0)),            # ln2 beta
            pl.BlockSpec((D, D_INNER), lambda i: (0, 0)),      # W1
            pl.BlockSpec((1, D_INNER), lambda i: (0, 0)),      # b1
            pl.BlockSpec((D_INNER, D), lambda i: (0, 0)),      # W2
            pl.BlockSpec((1, D), lambda i: (0, 0)),            # b2
        ],
        out_specs=pl.BlockSpec((N, D), lambda i: (0, 0)),
        compiler_params=pltpu.CompilerParams(
            dimension_semantics=("arbitrary",)),   # single invocation; keep on one TC
        cost_estimate=cost,
    )(x2d, params["wqkv"], params["wo"],
      params["ln1_g"], params["ln1_b"], params["ln2_g"], params["ln2_b"],
      params["w1"], params["b1"], params["w2"], params["b2"])

    return out.reshape(S, B, D)   # free reshape back to [S, B, D]


# ---------------------------------------------------------------------------
# Pure-JAX reference (mirrors the PyTorch forward math) for verification.
# ---------------------------------------------------------------------------
def reference(dec_inp, p):
    S, B, D = dec_inp.shape
    scale = 1.0 / (D_HEAD ** 0.5)

    def ln(x, g, b):
        mu = x.mean(-1, keepdims=True)
        var = ((x - mu) ** 2).mean(-1, keepdims=True)
        return (x - mu) / jnp.sqrt(var + EPS) * g + b

    wqkv = p["wqkv"]
    q = jnp.einsum('sbd,de->sbe', dec_inp, wqkv[:, :HDH])
    k = jnp.einsum('sbd,de->sbe', dec_inp, wqkv[:, HDH:2 * HDH])
    v = jnp.einsum('sbd,de->sbe', dec_inp, wqkv[:, 2 * HDH:])
    qh = q.reshape(S, B, N_HEAD, D_HEAD)
    kh = k.reshape(S, B, N_HEAD, D_HEAD)
    vh = v.reshape(S, B, N_HEAD, D_HEAD)
    score = jnp.einsum('ibnd,jbnd->ijbn', qh, kh) * scale
    prob = jax.nn.softmax(score, axis=1)
    attn_vec = jnp.einsum('ijbn,jbnd->ibnd', prob, vh).reshape(S, B, HDH)
    attn_out = jnp.einsum('sbe,ed->sbd', attn_vec, p['wo'])
    h = ln(dec_inp + attn_out, p['ln1_g'][0], p['ln1_b'][0])
    xn = ln(h, p['ln2_g'][0], p['ln2_b'][0])
    core = jnp.maximum(xn @ p['w1'] + p['b1'][0], 0.0) @ p['w2'] + p['b2'][0]
    return core


def make_params(key):
    ks = jax.random.split(key, 8)
    s = 0.1
    return {
        "wqkv": jax.random.normal(ks[0], (D_MODEL, 3 * HDH), jnp.float32) * s,
        "wo": jax.random.normal(ks[2], (HDH, D_MODEL), jnp.float32) * s,
        "ln1_g": jnp.ones((1, D_MODEL), jnp.float32),
        "ln1_b": jnp.zeros((1, D_MODEL), jnp.float32),
        "ln2_g": jnp.ones((1, D_MODEL), jnp.float32),
        "ln2_b": jnp.zeros((1, D_MODEL), jnp.float32),
        "w1": jax.random.normal(ks[3], (D_MODEL, D_INNER), jnp.float32) * s,
        "b1": jax.random.normal(ks[4], (1, D_INNER), jnp.float32) * s,
        "w2": jax.random.normal(ks[5], (D_INNER, D_MODEL), jnp.float32) * s,
        "b2": jax.random.normal(ks[6], (1, D_MODEL), jnp.float32) * s,
    }


if __name__ == "__main__":
    key = jax.random.PRNGKey(0)
    k_inp, k_par = jax.random.split(key)
    dec_inp = jax.random.normal(k_inp, (SEQ, BATCH, D_MODEL), jnp.float32)
    params = make_params(k_par)

    out = decoder_layer(dec_inp, params)
    out = jax.block_until_ready(out)

    ref = reference(dec_inp, params)
    assert out.shape == (SEQ, BATCH, D_MODEL)
    # Tolerance slightly relaxed vs 1e-4 because softmax uses the EUP
    # approximate reciprocal (pl.reciprocal(approx=True)).
    assert jnp.allclose(out, ref, rtol=1e-3, atol=1e-3), \
        f"max abs err {jnp.max(jnp.abs(out - ref))}"
    print("KERNEL_OK")
</pallas_src>

<mosaic_0001>
module attributes {stable_mosaic.version = 11 : i64} {
  func.func @decoder_layer_kernel(%arg0: i32, %arg1: memref<16x32xf32, #tpu.memory_space<vmem>>, %arg2: memref<32x96xf32, #tpu.memory_space<vmem>>, %arg3: memref<32x32xf32, #tpu.memory_space<vmem>>, %arg4: memref<1x32xf32, #tpu.memory_space<vmem>>, %arg5: memref<1x32xf32, #tpu.memory_space<vmem>>, %arg6: memref<1x32xf32, #tpu.memory_space<vmem>>, %arg7: memref<1x32xf32, #tpu.memory_space<vmem>>, %arg8: memref<32x64xf32, #tpu.memory_space<vmem>>, %arg9: memref<1x64xf32, #tpu.memory_space<vmem>>, %arg10: memref<64x32xf32, #tpu.memory_space<vmem>>, %arg11: memref<1x32xf32, #tpu.memory_space<vmem>>, %arg12: memref<16x32xf32, #tpu.memory_space<vmem>>) attributes {dimension_semantics = [#tpu.dimension_semantics<arbitrary>], iteration_bounds = array<i64: 1>, scalar_prefetch = 0 : i64, scratch_operands = 0 : i64, tpu.core_type = #tpu.core_type<tc>, window_params = [{pipeline_mode = #tpu.pipeline_mode<synchronous>, transform_indices = @transform_0, window_bounds = array<i64: 16, 32>}, {pipeline_mode = #tpu.pipeline_mode<synchronous>, transform_indices = @transform_1, window_bounds = array<i64: 32, 96>}, {pipeline_mode = #tpu.pipeline_mode<synchronous>, transform_indices = @transform_2, window_bounds = array<i64: 32, 32>}, {pipeline_mode = #tpu.pipeline_mode<synchronous>, transform_indices = @transform_3, window_bounds = array<i64: 1, 32>}, {pipeline_mode = #tpu.pipeline_mode<synchronous>, transform_indices = @transform_4, window_bounds = array<i64: 1, 32>}, {pipeline_mode = #tpu.pipeline_mode<synchronous>, transform_indices = @transform_5, window_bounds = array<i64: 1, 32>}, {pipeline_mode = #tpu.pipeline_mode<synchronous>, transform_indices = @transform_6, window_bounds = array<i64: 1, 32>}, {pipeline_mode = #tpu.pipeline_mode<synchronous>, transform_indices = @transform_7, window_bounds = array<i64: 32, 64>}, {pipeline_mode = #tpu.pipeline_mode<synchronous>, transform_indices = @transform_8, window_bounds = array<i64: 1, 64>}, {pipeline_mode = #tpu.pipeline_mode<synchronous>, transform_indices = @transform_9, window_bounds = array<i64: 64, 32>}, {pipeline_mode = #tpu.pipeline_mode<synchronous>, transform_indices = @transform_10, window_bounds = array<i64: 1, 32>}, {pipeline_mode = #tpu.pipeline_mode<synchronous>, transform_indices = @transform_11, window_bounds = array<i64: 16, 32>}]} {
    %c0 = arith.constant 0 : index
    %c0_0 = arith.constant 0 : index
    %0 = vector.load %arg1[%c0, %c0_0] : memref<16x32xf32, #tpu.memory_space<vmem>>, vector<16x32xf32>
    %c0_1 = arith.constant 0 : index
    %c0_2 = arith.constant 0 : index
    %1 = vector.load %arg2[%c0_1, %c0_2] : memref<32x96xf32, #tpu.memory_space<vmem>>, vector<32x96xf32>
    %cst = arith.constant dense<0.000000e+00> : vector<16x96xf32>
    %2 = tpu.matmul %0, %1, %cst {dimension_numbers = #tpu.dot_dimension_numbers<[1], [0], [0], [1], [0, 0, 1, 1], [], []>} : vector<16x32xf32>, vector<32x96xf32>, vector<16x96xf32> -> vector<16x96xf32>
    %3 = tpu.iota {dimensions = array<i32: 0>} : vector<16x16xi32>
    %4 = tpu.iota {dimensions = array<i32: 1>} : vector<16x16xi32>
    %c2_i32 = arith.constant 2 : i32
    %c0_i32 = arith.constant 0 : i32
    %5 = arith.cmpi eq, %c2_i32, %c0_i32 : i32
    %c1_i32 = arith.constant 1 : i32
    %6 = arith.select %5, %c1_i32, %c2_i32 : i32
    %7 = vector.broadcast %6 : i32 to vector<16x16xi32>
    %8 = arith.remsi %3, %7 : vector<16x16xi32>
    %c0_i32_3 = arith.constant 0 : i32
    %9 = vector.broadcast %c0_i32_3 : i32 to vector<16x16xi32>
    %10 = arith.cmpi ne, %8, %9 : vector<16x16xi32>
    %c0_i32_4 = arith.constant 0 : i32
    %11 = vector.broadcast %c0_i32_4 : i32 to vector<16x16xi32>
    %12 = arith.cmpi slt, %8, %11 : vector<16x16xi32>
    %c0_i32_5 = arith.constant 0 : i32
    %13 = arith.cmpi slt, %6, %c0_i32_5 : i32
    %14 = vector.broadcast %13 : i1 to vector<16x16xi1>
    %15 = vector.broadcast %14 : vector<16x16xi1> to vector<16x16xi1>
    %16 = arith.xori %12, %15 : vector<16x16xi1>
    %17 = arith.andi %16, %10 : vector<16x16xi1>
    %18 = vector.broadcast %6 : i32 to vector<16x16xi32>
    %19 = arith.addi %8, %18 : vector<16x16xi32>
    %20 = arith.select %17, %19, %8 : vector<16x16xi1>, vector<16x16xi32>
    %c2_i32_6 = arith.constant 2 : i32
    %c0_i32_7 = arith.constant 0 : i32
    %21 = arith.cmpi eq, %c2_i32_6, %c0_i32_7 : i32
    %c1_i32_8 = arith.constant 1 : i32
    %22 = arith.select %21, %c1_i32_8, %c2_i32_6 : i32
    %23 = vector.broadcast %22 : i32 to vector<16x16xi32>
    %24 = arith.remsi %4, %23 : vector<16x16xi32>
    %c0_i32_9 = arith.constant 0 : i32
    %25 = vector.broadcast %c0_i32_9 : i32 to vector<16x16xi32>
    %26 = arith.cmpi ne, %24, %25 : vector<16x16xi32>
    %c0_i32_10 = arith.constant 0 : i32
    %27 = vector.broadcast %c0_i32_10 : i32 to vector<16x16xi32>
    %28 = arith.cmpi slt, %24, %27 : vector<16x16xi32>
    %c0_i32_11 = arith.constant 0 : i32
    %29 = arith.cmpi slt, %22, %c0_i32_11 : i32
    %30 = vector.broadcast %29 : i1 to vector<16x16xi1>
    %31 = vector.broadcast %30 : vector<16x16xi1> to vector<16x16xi1>
    %32 = arith.xori %28, %31 : vector<16x16xi1>
    %33 = arith.andi %32, %26 : vector<16x16xi1>
    %34 = vector.broadcast %22 : i32 to vector<16x16xi32>
    %35 = arith.addi %24, %34 : vector<16x16xi32>
    %36 = arith.select %33, %35, %24 : vector<16x16xi1>, vector<16x16xi32>
    %37 = arith.cmpi eq, %20, %36 : vector<16x16xi32>
    %cst_12 = arith.constant 0.000000e+00 : f32
    %38 = vector.broadcast %cst_12 : f32 to vector<16x32xf32>
    %39 = vector.extract_strided_slice %2 {offsets = [0, 0], sizes = [16, 16], strides = [1, 1]} : vector<16x96xf32> to vector<16x16xf32>
    %40 = vector.extract_strided_slice %2 {offsets = [0, 32], sizes = [16, 16], strides = [1, 1]} : vector<16x96xf32> to vector<16x16xf32>
    %41 = vector.extract_strided_slice %2 {offsets = [0, 64], sizes = [16, 16], strides = [1, 1]} : vector<16x96xf32> to vector<16x16xf32>
    %cst_13 = arith.constant dense<0.000000e+00> : vector<16x16xf32>
    %42 = tpu.matmul %39, %40, %cst_13 {dimension_numbers = #tpu.dot_dimension_numbers<[1], [1], [0], [0], [0, 0, 1, 0], [], []>} : vector<16x16xf32>, vector<16x16xf32>, vector<16x16xf32> -> vector<16x16xf32>
    %cst_14 = arith.constant 2.500000e-01 : f32
    %43 = vector.broadcast %cst_14 : f32 to vector<16x16xf32>
    %44 = arith.mulf %42, %43 : vector<16x16xf32>
    %cst_15 = arith.constant -1.000000e+30 : f32
    %45 = vector.broadcast %cst_15 : f32 to vector<16x16xf32>
    %46 = arith.select %37, %44, %45 : vector<16x16xi1>, vector<16x16xf32>
    %cst_16 = arith.constant dense<0xFF800000> : vector<16xf32>
    %47 = vector.multi_reduction <maximumf>, %46, %cst_16 [1] : vector<16x16xf32> to vector<16xf32>
    %48 = vector.shape_cast %47 : vector<16xf32> to vector<16x1xf32>
    %49 = vector.broadcast %48 : vector<16x1xf32> to vector<16x16xf32>
    %50 = arith.subf %46, %49 : vector<16x16xf32>
    %51 = math.exp %50 : vector<16x16xf32>
    %cst_17 = arith.constant dense<0.000000e+00> : vector<16xf32>
    %52 = vector.multi_reduction <add>, %51, %cst_17 [1] : vector<16x16xf32> to vector<16xf32>
    %53 = vector.shape_cast %52 : vector<16xf32> to vector<16x1xf32>
    %54 = tpu.reciprocal %53 {approx = true} : vector<16x1xf32> -> vector<16x1xf32>
    %55 = vector.broadcast %54 : vector<16x1xf32> to vector<16x16xf32>
    %56 = arith.mulf %51, %55 : vector<16x16xf32>
    %cst_18 = arith.constant dense<0.000000e+00> : vector<16x16xf32>
    %57 = tpu.matmul %56, %41, %cst_18 {dimension_numbers = #tpu.dot_dimension_numbers<[1], [0], [0], [1], [0, 0, 1, 1], [], []>} : vector<16x16xf32>, vector<16x16xf32>, vector<16x16xf32> -> vector<16x16xf32>
    %c0_19 = arith.constant 0 : index
    %c0_20 = arith.constant 0 : index
    %58 = vector.load %arg3[%c0_19, %c0_20] : memref<32x32xf32, #tpu.memory_space<vmem>>, vector<16x32xf32>
    %cst_21 = arith.constant dense<0.000000e+00> : vector<16x32xf32>
    %59 = tpu.matmul %57, %58, %cst_21 {dimension_numbers = #tpu.dot_dimension_numbers<[1], [0], [0], [1], [0, 0, 1, 1], [], []>} : vector<16x16xf32>, vector<16x32xf32>, vector<16x32xf32> -> vector<16x32xf32>
    %60 = arith.addf %38, %59 : vector<16x32xf32>
    %61 = vector.extract_strided_slice %2 {offsets = [0, 16], sizes = [16, 16], strides = [1, 1]} : vector<16x96xf32> to vector<16x16xf32>
    %62 = vector.extract_strided_slice %2 {offsets = [0, 48], sizes = [16, 16], strides = [1, 1]} : vector<16x96xf32> to vector<16x16xf32>
    %63 = vector.extract_strided_slice %2 {offsets = [0, 80], sizes = [16, 16], strides = [1, 1]} : vector<16x96xf32> to vector<16x16xf32>
    %cst_22 = arith.constant dense<0.000000e+00> : vector<16x16xf32>
    %64 = tpu.matmul %61, %62, %cst_22 {dimension_numbers = #tpu.dot_dimension_numbers<[1], [1], [0], [0], [0, 0, 1, 0], [], []>} : vector<16x16xf32>, vector<16x16xf32>, vector<16x16xf32> -> vector<16x16xf32>
    %cst_23 = arith.constant 2.500000e-01 : f32
    %65 = vector.broadcast %cst_23 : f32 to vector<16x16xf32>
    %66 = arith.mulf %64, %65 : vector<16x16xf32>
    %cst_24 = arith.constant -1.000000e+30 : f32
    %67 = vector.broadcast %cst_24 : f32 to vector<16x16xf32>
    %68 = arith.select %37, %66, %67 : vector<16x16xi1>, vector<16x16xf32>
    %cst_25 = arith.constant dense<0xFF800000> : vector<16xf32>
    %69 = vector.multi_reduction <maximumf>, %68, %cst_25 [1] : vector<16x16xf32> to vector<16xf32>
    %70 = vector.shape_cast %69 : vector<16xf32> to vector<16x1xf32>
    %71 = vector.broadcast %70 : vector<16x1xf32> to vector<16x16xf32>
    %72 = arith.subf %68, %71 : vector<16x16xf32>
    %73 = math.exp %72 : vector<16x16xf32>
    %cst_26 = arith.constant dense<0.000000e+00> : vector<16xf32>
    %74 = vector.multi_reduction <add>, %73, %cst_26 [1] : vector<16x16xf32> to vector<16xf32>
    %75 = vector.shape_cast %74 : vector<16xf32> to vector<16x1xf32>
    %76 = tpu.reciprocal %75 {approx = true} : vector<16x1xf32> -> vector<16x1xf32>
    %77 = vector.broadcast %76 : vector<16x1xf32> to vector<16x16xf32>
    %78 = arith.mulf %73, %77 : vector<16x16xf32>
    %cst_27 = arith.constant dense<0.000000e+00> : vector<16x16xf32>
    %79 = tpu.matmul %78, %63, %cst_27 {dimension_numbers = #tpu.dot_dimension_numbers<[1], [0], [0], [1], [0, 0, 1, 1], [], []>} : vector<16x16xf32>, vector<16x16xf32>, vector<16x16xf32> -> vector<16x16xf32>
    %c16 = arith.constant 16 : index
    %c0_28 = arith.constant 0 : index
    %80 = vector.load %arg3[%c16, %c0_28] : memref<32x32xf32, #tpu.memory_space<vmem>>, vector<16x32xf32>
    %cst_29 = arith.constant dense<0.000000e+00> : vector<16x32xf32>
    %81 = tpu.matmul %79, %80, %cst_29 {dimension_numbers = #tpu.dot_dimension_numbers<[1], [0], [0], [1], [0, 0, 1, 1], [], []>} : vector<16x16xf32>, vector<16x32xf32>, vector<16x32xf32> -> vector<16x32xf32>
    %82 = arith.addf %60, %81 : vector<16x32xf32>
    %83 = arith.addf %0, %82 : vector<16x32xf32>
    %c0_30 = arith.constant 0 : index
    %c0_31 = arith.constant 0 : index
    %84 = vector.load %arg4[%c0_30, %c0_31] : memref<1x32xf32, #tpu.memory_space<vmem>>, vector<1x32xf32>
    %c0_32 = arith.constant 0 : index
    %c0_33 = arith.constant 0 : index
    %85 = vector.load %arg5[%c0_32, %c0_33] : memref<1x32xf32, #tpu.memory_space<vmem>>, vector<1x32xf32>
    %cst_34 = arith.constant dense<0.000000e+00> : vector<16xf32>
    %86 = vector.multi_reduction <add>, %83, %cst_34 [1] : vector<16x32xf32> to vector<16xf32>
    %87 = vector.shape_cast %86 : vector<16xf32> to vector<16x1xf32>
    %cst_35 = arith.constant 3.200000e+01 : f32
    %88 = vector.broadcast %cst_35 : f32 to vector<16x1xf32>
    %89 = arith.divf %87, %88 : vector<16x1xf32>
    %90 = vector.broadcast %89 : vector<16x1xf32> to vector<16x32xf32>
    %91 = arith.subf %83, %90 : vector<16x32xf32>
    %92 = arith.mulf %91, %91 : vector<16x32xf32>
    %cst_36 = arith.constant dense<0.000000e+00> : vector<16xf32>
    %93 = vector.multi_reduction <add>, %92, %cst_36 [1] : vector<16x32xf32> to vector<16xf32>
    %94 = vector.shape_cast %93 : vector<16xf32> to vector<16x1xf32>
    %cst_37 = arith.constant 3.200000e+01 : f32
    %95 = vector.broadcast %cst_37 : f32 to vector<16x1xf32>
    %96 = arith.divf %94, %95 : vector<16x1xf32>
    %97 = vector.broadcast %89 : vector<16x1xf32> to vector<16x32xf32>
    %98 = arith.subf %83, %97 : vector<16x32xf32>
    %cst_38 = arith.constant 9.99999974E-6 : f32
    %99 = vector.broadcast %cst_38 : f32 to vector<16x1xf32>
    %100 = arith.addf %96, %99 : vector<16x1xf32>
    %101 = math.rsqrt %100 : vector<16x1xf32>
    %102 = vector.broadcast %101 : vector<16x1xf32> to vector<16x32xf32>
    %103 = arith.mulf %98, %102 : vector<16x32xf32>
    %104 = vector.broadcast %84 : vector<1x32xf32> to vector<16x32xf32>
    %105 = arith.mulf %103, %104 : vector<16x32xf32>
    %106 = vector.broadcast %85 : vector<1x32xf32> to vector<16x32xf32>
    %107 = arith.addf %105, %106 : vector<16x32xf32>
    %c0_39 = arith.constant 0 : index
    %c0_40 = arith.constant 0 : index
    %108 = vector.load %arg6[%c0_39, %c0_40] : memref<1x32xf32, #tpu.memory_space<vmem>>, vector<1x32xf32>
    %c0_41 = arith.constant 0 : index
    %c0_42 = arith.constant 0 : index
    %109 = vector.load %arg7[%c0_41, %c0_42] : memref<1x32xf32, #tpu.memory_space<vmem>>, vector<1x32xf32>
    %cst_43 = arith.constant dense<0.000000e+00> : vector<16xf32>
    %110 = vector.multi_reduction <add>, %107, %cst_43 [1] : vector<16x32xf32> to vector<16xf32>
    %111 = vector.shape_cast %110 : vector<16xf32> to vector<16x1xf32>
    %cst_44 = arith.constant 3.200000e+01 : f32
    %112 = vector.broadcast %cst_44 : f32 to vector<16x1xf32>
    %113 = arith.divf %111, %112 : vector<16x1xf32>
    %114 = vector.broadcast %113 : vector<16x1xf32> to vector<16x32xf32>
    %115 = arith.subf %107, %114 : vector<16x32xf32>
    %116 = arith.mulf %115, %115 : vector<16x32xf32>
    %cst_45 = arith.constant dense<0.000000e+00> : vector<16xf32>
    %117 = vector.multi_reduction <add>, %116, %cst_45 [1] : vector<16x32xf32> to vector<16xf32>
    %118 = vector.shape_cast %117 : vector<16xf32> to vector<16x1xf32>
    %cst_46 = arith.constant 3.200000e+01 : f32
    %119 = vector.broadcast %cst_46 : f32 to vector<16x1xf32>
    %120 = arith.divf %118, %119 : vector<16x1xf32>
    %121 = vector.broadcast %113 : vector<16x1xf32> to vector<16x32xf32>
    %122 = arith.subf %107, %121 : vector<16x32xf32>
    %cst_47 = arith.constant 9.99999974E-6 : f32
    %123 = vector.broadcast %cst_47 : f32 to vector<16x1xf32>
    %124 = arith.addf %120, %123 : vector<16x1xf32>
    %125 = math.rsqrt %124 : vector<16x1xf32>
    %126 = vector.broadcast %125 : vector<16x1xf32> to vector<16x32xf32>
    %127 = arith.mulf %122, %126 : vector<16x32xf32>
    %128 = vector.broadcast %108 : vector<1x32xf32> to vector<16x32xf32>
    %129 = arith.mulf %127, %128 : vector<16x32xf32>
    %130 = vector.broadcast %109 : vector<1x32xf32> to vector<16x32xf32>
    %131 = arith.addf %129, %130 : vector<16x32xf32>
    %c0_48 = arith.constant 0 : index
    %c0_49 = arith.constant 0 : index
    %132 = vector.load %arg8[%c0_48, %c0_49] : memref<32x64xf32, #tpu.memory_space<vmem>>, vector<32x64xf32>
    %cst_50 = arith.constant dense<0.000000e+00> : vector<16x64xf32>
    %133 = tpu.matmul %131, %132, %cst_50 {dimension_numbers = #tpu.dot_dimension_numbers<[1], [0], [0], [1], [0, 0, 1, 1], [], []>} : vector<16x32xf32>, vector<32x64xf32>, vector<16x64xf32> -> vector<16x64xf32>
    %c0_51 = arith.constant 0 : index
    %c0_52 = arith.constant 0 : index
    %134 = vector.load %arg9[%c0_51, %c0_52] : memref<1x64xf32, #tpu.memory_space<vmem>>, vector<1x64xf32>
    %135 = vector.broadcast %134 : vector<1x64xf32> to vector<16x64xf32>
    %136 = arith.addf %133, %135 : vector<16x64xf32>
    %cst_53 = arith.constant 0.000000e+00 : f32
    %137 = vector.broadcast %cst_53 : f32 to vector<16x64xf32>
    %138 = arith.maximumf %136, %137 : vector<16x64xf32>
    %c0_54 = arith.constant 0 : index
    %c0_55 = arith.constant 0 : index
    %139 = vector.load %arg10[%c0_54, %c0_55] : memref<64x32xf32, #tpu.memory_space<vmem>>, vector<64x32xf32>
    %cst_56 = arith.constant dense<0.000000e+00> : vector<16x32xf32>
    %140 = tpu.matmul %138, %139, %cst_56 {dimension_numbers = #tpu.dot_dimension_numbers<[1], [0], [0], [1], [0, 0, 1, 1], [], []>} : vector<16x64xf32>, vector<64x32xf32>, vector<16x32xf32> -> vector<16x32xf32>
    %c0_57 = arith.constant 0 : index
    %c0_58 = arith.constant 0 : index
    %141 = vector.load %arg11[%c0_57, %c0_58] : memref<1x32xf32, #tpu.memory_space<vmem>>, vector<1x32xf32>
    %142 = vector.broadcast %141 : vector<1x32xf32> to vector<16x32xf32>
    %143 = arith.addf %140, %142 : vector<16x32xf32>
    %c0_59 = arith.constant 0 : index
    %c0_60 = arith.constant 0 : index
    %144 = vector.load %arg12[%c0_59, %c0_60] : memref<16x32xf32, #tpu.memory_space<vmem>>, vector<16x32xf32>
    tpu.vector_store %arg12[%c0_59, %c0_60], %143 {strides = array<i32>} : memref<16x32xf32, #tpu.memory_space<vmem>>, vector<16x32xf32>,
    return
  }
  func.func @transform_0(%arg0: i32) -> (i32, i32) {
    %c0_i32 = arith.constant 0 : i32
    %c0_i32_0 = arith.constant 0 : i32
    %c0_i32_1 = arith.constant 0 : i32
    return %c0_i32, %c0_i32_0 : i32, i32
  }
  func.func @transform_1(%arg0: i32) -> (i32, i32) {
    %c0_i32 = arith.constant 0 : i32
    %c0_i32_0 = arith.constant 0 : i32
    %c0_i32_1 = arith.constant 0 : i32
    return %c0_i32, %c0_i32_0 : i32, i32
  }
  func.func @transform_2(%arg0: i32) -> (i32, i32) {
    %c0_i32 = arith.constant 0 : i32
    %c0_i32_0 = arith.constant 0 : i32
    %c0_i32_1 = arith.constant 0 : i32
    return %c0_i32, %c0_i32_0 : i32, i32
  }
  func.func @transform_3(%arg0: i32) -> (i32, i32) {
    %c0_i32 = arith.constant 0 : i32
    %c0_i32_0 = arith.constant 0 : i32
    %c0_i32_1 = arith.constant 0 : i32
    return %c0_i32, %c0_i32_0 : i32, i32
  }
  func.func @transform_4(%arg0: i32) -> (i32, i32) {
    %c0_i32 = arith.constant 0 : i32
    %c0_i32_0 = arith.constant 0 : i32
    %c0_i32_1 = arith.constant 0 : i32
    return %c0_i32, %c0_i32_0 : i32, i32
  }
  func.func @transform_5(%arg0: i32) -> (i32, i32) {
    %c0_i32 = arith.constant 0 : i32
    %c0_i32_0 = arith.constant 0 : i32
    %c0_i32_1 = arith.constant 0 : i32
    return %c0_i32, %c0_i32_0 : i32, i32
  }
  func.func @transform_6(%arg0: i32) -> (i32, i32) {
    %c0_i32 = arith.constant 0 : i32
    %c0_i32_0 = arith.constant 0 : i32
    %c0_i32_1 = arith.constant 0 : i32
    return %c0_i32, %c0_i32_0 : i32, i32
  }
  func.func @transform_7(%arg0: i32) -> (i32, i32) {
    %c0_i32 = arith.constant 0 : i32
    %c0_i32_0 = arith.constant 0 : i32
    %c0_i32_1 = arith.constant 0 : i32
    return %c0_i32, %c0_i32_0 : i32, i32
  }
  func.func @transform_8(%arg0: i32) -> (i32, i32) {
    %c0_i32 = arith.constant 0 : i32
    %c0_i32_0 = arith.constant 0 : i32
    %c0_i32_1 = arith.constant 0 : i32
    return %c0_i32, %c0_i32_0 : i32, i32
  }
  func.func @transform_9(%arg0: i32) -> (i32, i32) {
    %c0_i32 = arith.constant 0 : i32
    %c0_i32_0 = arith.constant 0 : i32
    %c0_i32_1 = arith.constant 0 : i32
    return %c0_i32, %c0_i32_0 : i32, i32
  }
  func.func @transform_10(%arg0: i32) -> (i32, i32) {
    %c0_i32 = arith.constant 0 : i32
    %c0_i32_0 = arith.constant 0 : i32
    %c0_i32_1 = arith.constant 0 : i32
    return %c0_i32, %c0_i32_0 : i32, i32
  }
  func.func @transform_11(%arg0: i32) -> (i32, i32) {
    %c0_i32 = arith.constant 0 : i32
    %c0_i32_0 = arith.constant 0 : i32
    %c0_i32_1 = arith.constant 0 : i32
    return %c0_i32, %c0_i32_0 : i32, i32
  }
}

</mosaic_0001>

<bundles_post_ra>
// kernel: tpu_custom_call.1
= control target key start
LH: loop header
LB: loop body
LE: loop exit
PB: predicated region body
PF: predicated region fallthrough
CT: control target
= control target key end

     0   :  { %16 = vsyncpa [#allocation3], 0  ;;  %s962_s0 = inlined_call_operand.hbm [shape: f32[16,32], index: 0, kind: input, shape index: {}]   ;;  %s963_s1 = inlined_call_operand.vmem [shape: f32[32,96], index: 1, kind: input, shape index: {}]   ;;  %s964_s2 = inlined_call_operand.vmem [shape: f32[32,32], index: 2, kind: input, shape index: {}]   ;;  %s965_s3 = inlined_call_operand.vmem [shape: f32[1,32], index: 3, kind: input, shape index: {}]   ;;  %s966_s4 = inlined_call_operand.vmem [shape: f32[1,32], index: 4, kind: input, shape index: {}]   ;;  %s967_s5 = inlined_call_operand.vmem [shape: f32[1,32], index: 5, kind: input, shape index: {}]   ;;  %s968_s6 = inlined_call_operand.vmem [shape: f32[1,32], index: 6, kind: input, shape index: {}]   ;;  %s969_s7 = inlined_call_operand.vmem [shape: f32[32,64], index: 7, kind: input, shape index: {}]   ;;  %s970_s8 = inlined_call_operand.vmem [shape: f32[1,64], index: 8, kind: input, shape index: {}]   ;;  %s971_s9 = inlined_call_operand.vmem [shape: f32[64,32], index: 9, kind: input, shape index: {}]   ;;  %s972_s10 = inlined_call_operand.vmem [shape: f32[1,32], index: 10, kind: input, shape index: {}]   ;;  %s973_s11 = inlined_call_operand.hbm [shape: f32[16,32], index: 11, kind: output, shape index: {}]  }
   0x1   :  { %17 = vsyncpa [#allocation4], 0  ;;  %s22_s19 = sshll.u32 %s962_s0, 4  ;;  %s746_s20 = smov [#allocation2]   ;;  %s23_s19 = int_to_ptr.hbm [resolvable:$true] %s22_s19 }
   0x2   :  { %s24_s21 = sshll.u32 %s746_s20, 4  ;;  %s747_s22 = smov 128   ;;  %s25_s21 = int_to_ptr.vmem [resolvable:$true] %s24_s21 }
   0x3   :  { %s748_s23 = smov 8  }
   0x4   :  { %30 = dma.hbm_to_vmem [thread:$0]  %s23_s19, 256, %s25_s21, [#allocation3], %s747_s22, %s747_s22, %s748_s23  }
   0x5   :  { %742 = dma.done.wait [#allocation3], 256  }
   0x6   :  { %743 = vsyncadd [#allocation3], 4294967040  ;;  %v60_v0 = vld [vmem:[%s963_s1 + $0x18] sm:$0xff]  ;;  %v59_v1 = vld [vmem:[%s963_s1 + $0x10] sm:$0xff]  ;;  %vm61_vm0 = vcmask 261120   ;;  %s749_s12 = smov 112   ;;  %v91_v14 = vlaneseq }
   0x7   :  { %80 = vmatpush.msra.mxu0 %v60_v0  ;;  %v58_v2 = vld [vmem:[%s963_s1 + $0x8] sm:$0xff]  ;;  %v57_v3 = vld [vmem:[%s963_s1] sm:$0xff]  ;;  %s750_s13 = smov 80   ;;  %s751_s1 = smov 96   ;;  %vm140_vm1 = vcmask 130048  }
   0x8   :  { %v834_v4 = vld [vmem:[#allocation2] sm:$0xff]  ;;  %v838_v5 = vld [vmem:[#allocation2 + $0x8] sm:$0xff]  ;;  %v92_v15 = vshrl.u32 %v91_v14, 7  ;;  %v95_v16 = vand.u32 127, %v91_v14  ;;  %s752_s14 = smov 64   ;;  %s753_s15 = smov 48  }
   0x9   :  { %81 = vmatpush.msra.mxu0 %v59_v1  ;;  %v234_v61 = vld [vmem:[%s964_s2 + $0x8] sm:$0xff] }
   0xa   :  { %v100_v17 = vand.u32 1, %v92_v15  ;;  %v124_v18 = vand.u32 1, %v95_v16  ;;  %v93_v20 = vadd.s32 8, %v92_v15  ;;  %v336_v15 = vld [vmem:[%s964_s2 + $0x18] sm:$0xff]  ;;  %v233_v16 = vld [vmem:[%s964_s2] sm:$0xff] }
   0xb   :  { %82 = vmatpush.msra.mxu0 %v58_v2 }
   0xc   :  { %vm132_vm2 = vcmp.eq.s32.totalorder %v100_v17, %v124_v18  ;;  %v107_v24 = vand.u32 1, %v93_v20  ;;  %v335_v17 = vld [vmem:[%s964_s2 + $0x10] sm:$0xff] }
   0xd   :  { %83 = vmatpush.msra.mxu0 %v57_v3 }
   0xe   :  { %618 = vmatmul.msk.f32.vlgmr.msra.gmra.mxu0 %vm61_vm0, %v834_v4  ;;  %vm133_vm3 = vcmp.eq.s32.totalorder %v107_v24, %v124_v18 }
  0x16   :  { %619 = vmatmul.msk.f32.gmra.mxu0 %vm61_vm0, %v838_v5 }
  0x8b   :  { %v85_v6 = vpop.f32.mrf.mxu0 }
  0x8c   :  { %235 = vrot.lane.b32.xlu2 %v85_v6, %s749_s12 }
  0x93   :  { %v88_v7 = vpop.f32.mrf.mxu0 }
  0x94   :  { %237 = vrot.lane.b32.xlu2 %v88_v7, %s749_s12  ;;  %241 = vrot.lane.b32.xlu1 %v88_v7, %s750_s13  ;;  %v652_v37 = vpack.i.bf16 %v85_v6, %v88_v7 }
  0x95   :  { %138 = vrot.lane.b32.xlu0 %v88_v7, %s751_s1 }
  0x9c   :  { %239 = vrot.lane.b32.xlu1 %v85_v6, %s750_s13 }
  0x9d   :  { %136 = vrot.lane.b32.xlu0 %v85_v6, %s751_s1 }
  0xe6   :  { %v236_v11 = vpop.permute.xlu2 %235 }
  0xee   :  { %v238_v13 = vpop.permute.xlu2 %237 }
 0x106   :  { %v242_v8 = vpop.permute.xlu1 %241 }
 0x107   :  { %v139_v9 = vpop.permute.xlu0 %138  ;;  %626 = vmatpush.xpose.msk.msra.mxu3 %vm140_vm1, %v242_v8 }
 0x108   :  { %620 = vmatpush.xpose.msk.msra.mxu1 %vm140_vm1, %v139_v9 }
 0x10e   :  { %v240_v10 = vpop.permute.xlu1 %239 }
 0x10f   :  { %v137_v12 = vpop.permute.xlu0 %136  ;;  %627 = vmatpush.xpose.msk.msra.mxu3 %vm140_vm1, %v240_v10 }
 0x110   :  { %621 = vmatpush.xpose.msk.msra.mxu1 %vm140_vm1, %v137_v12 }
 0x112   :  { %628 = vmatmul.msk.f32.vlgmr.msra.gmra.mxu3 %vm140_vm1, %v236_v11 }
 0x113   :  { %622 = vmatmul.msk.f32.vlgmr.msra.gmra.mxu1 %vm140_vm1, %v85_v6 }
 0x114   :  { %386 = vmatpush.msrb.mxu1 %v234_v61  ;;  %v662_v61 = vld [vmem:[%s965_s3] ss:$0 sm:$0xff] }
 0x116   :  { %387 = vmatpush.msrb.mxu1 %v233_v16 }
 0x11a   :  { %629 = vmatmul.msk.f32.gmra.mxu3 %vm140_vm1, %v238_v13 }
 0x11b   :  { %623 = vmatmul.msk.f32.gmra.mxu1 %vm140_vm1, %v88_v7 }
 0x190   :  { %v166_v19 = vpop.f32.mrf.mxu1 }
 0x191   :  { %v172_v21 = vmul.f32 0.25, %v166_v19 }
 0x193   :  { %v174_v22 = vsel %vm132_vm2, %v172_v21, -1e+30 }
 0x194   :  { %v176_v23 = vsel %vm140_vm1, %v174_v22, -inf }
 0x195   :  { %177 = vmax.xlane.f32.xlu2 %v176_v23  ;;  %v268_v25 = vpop.f32.mrf.mxu3 }
 0x196   :  { %v274_v26 = vmul.f32 0.25, %v268_v25 }
 0x198   :  { %v169_v27 = vpop.f32.mrf.mxu1  ;;  %v276_v28 = vsel %vm132_vm2, %v274_v26, -1e+30  ;;  %vm567_vm2 = vcmask 523264  }
 0x199   :  { %v173_v29 = vmul.f32 0.25, %v169_v27  ;;  %v278_v30 = vsel %vm140_vm1, %v276_v28, -inf }
 0x19a   :  { %279 = vmax.xlane.f32.xlu1 %v278_v30 }
 0x19b   :  { %v175_v31 = vsel %vm133_vm3, %v173_v29, -1e+30 }
 0x19c   :  { %v179_v32 = vsel %vm140_vm1, %v175_v31, -inf }
 0x19d   :  { %180 = vmax.xlane.f32.xlu0 %v179_v32  ;;  %v271_v33 = vpop.f32.mrf.mxu3  ;;  %v754_v32 = vmov 32.0  }
 0x19e   :  { %v275_v34 = vmul.f32 0.25, %v271_v33 }
 0x1a0   :  { %v277_v35 = vsel %vm133_vm3, %v275_v34, -1e+30 }
 0x1a1   :  { %v281_v36 = vsel %vm140_vm1, %v277_v35, -inf }
 0x1a2   :  { %282 = vmax.xlane.f32.xlu2 %v281_v36 }
 0x1b3   :  { %653 = vrot.lane.b32.xlu1 %v652_v37, %s752_s14 }
 0x208   :  { %v178_v40 = vpop.xlane.xlu2 %177 }
 0x209   :  { %v182_v44 = vsub.f32 %v174_v22, %v178_v40 }
 0x20b   :  { %v184_v46 = vmul.f32 1.442695, %v182_v44 }
 0x20d   :  { %v280_v38 = vpop.xlane.xlu1 %279 }
 0x20e   :  { %v284_v39 = vsub.f32 %v276_v28, %v280_v38 }
 0x210   :  { %v286_v41 = vmul.f32 1.442695, %v284_v39  ;;  %v181_v42 = vpop.xlane.xlu0 %180 }
 0x211   :  { %v183_v43 = vsub.f32 %v175_v31, %v181_v42 }
 0x212   :  { %668 = vpow2.f32 %v286_v41 }
 0x213   :  { %v186_v45 = vmul.f32 1.442695, %v183_v43 }
 0x215   :  { %670 = vpow2.f32 %v186_v45  ;;  %v283_v48 = vpop.xlane.xlu2 %282 }
 0x216   :  { %672 = vpow2.f32 %v184_v46  ;;  %v285_v51 = vsub.f32 %v277_v35, %v283_v48 }
 0x218   :  { %v669_v47 = vpop.eup %668  ;;  %v288_v53 = vmul.f32 1.442695, %v285_v51 }
 0x219   :  { %v290_v49 = vsel %vm140_vm1, %v669_v47, 0.0 }
 0x21a   :  { %291 = vadd.xlane.f32.xlu2 %v290_v49  ;;  %674 = vpow2.f32 %v288_v53 }
 0x21b   :  { %v671_v50 = vpop.eup %670 }
 0x21c   :  { %v191_v52 = vsel %vm140_vm1, %v671_v50, 0.0  ;;  %v673_v54 = vpop.eup %672 }
 0x21d   :  { %192 = vadd.xlane.f32.xlu0 %v191_v52  ;;  %v188_v55 = vsel %vm140_vm1, %v673_v54, 0.0 }
 0x220   :  { %v675_v59 = vpop.eup %674 }
 0x221   :  { %v293_v60 = vsel %vm140_vm1, %v675_v59, 0.0 }
 0x225   :  { %189 = vadd.xlane.f32.xlu0 %v188_v55  ;;  %v654_v56 = vpop.permute.xlu1 %653 }
 0x226   :  { %v655_v57 = vunpack.i.l.bf16 %v654_v56  ;;  %v656_v58 = vunpack.i.h.bf16 %v654_v56 }
 0x228   :  { %224 = vmatpush.msrb.mxu0 %v655_v57  ;;  %640 = vmatpush.msra.mxu2 %v655_v57 }
 0x22a   :  { %225 = vmatpush.msrb.mxu0 %v656_v58  ;;  %641 = vmatpush.msra.mxu2 %v656_v58 }
 0x22c   :  { %357 = vmatpush.msra.mxu0 %v336_v15 }
 0x22d   :  { %294 = vadd.xlane.f32.xlu0 %v293_v60 }
 0x22e   :  { %358 = vmatpush.msra.mxu0 %v335_v17 }
 0x232   :  { %658 = vrot.lane.b32.xlu2 %v652_v37, %s753_s15  ;;  %s605_s15 = sshll.u32 %s973_s11, 4  ;;  %s606_s15 = int_to_ptr.hbm [resolvable:$true] %s605_s15 }
 0x28d   :  { %v292_v62 = vpop.xlane.xlu2 %291 }
 0x290   :  { %v193_v63 = vpop.xlane.xlu0 %192 }
 0x291   :  { %676 = vrcp.f32 %v193_v63 }
 0x292   :  { %678 = vrcp.f32 %v292_v62 }
 0x295   :  { %v659_v0 = vpop.permute.xlu2 %658 }
 0x296   :  { %v660_v1 = vunpack.i.l.bf16 %v659_v0  ;;  %v661_v7 = vunpack.i.h.bf16 %v659_v0 }
 0x297   :  { %v677_v2 = vpop.eup %676 }
 0x298   :  { %v190_v3 = vpop.xlane.xlu0 %189  ;;  %326 = vmatpush.msrb.mxu2 %v660_v1  ;;  %v197_v6 = vmul.f32 %v677_v2, %v671_v50  ;;  %v679_v8 = vpop.eup %678  ;;  %v663_v1 = vld [vmem:[%s966_s4] ss:$0 sm:$0xff] }
 0x299   :  { %680 = vrcp.f32 %v190_v3  ;;  %v298_v12 = vmul.f32 %v679_v8, %v669_v47 }
 0x29a   :  { %625 = vmatmul.msk.f32.vlgmr.msra.gmra.mxu2 %vm140_vm1, %v197_v6 }
 0x29b   :  { %327 = vmatpush.msrb.mxu2 %v661_v7 }
 0x29f   :  { %v681_v9 = vpop.eup %680 }
 0x2a0   :  { %v295_v10 = vpop.xlane.xlu0 %294  ;;  %v196_v11 = vmul.f32 %v681_v9, %v673_v54 }
 0x2a1   :  { %682 = vrcp.f32 %v295_v10 }
 0x2a2   :  { %624 = vmatmul.msk.f32.vlgmr.msrb.gmra.mxu0 %vm140_vm1, %v196_v11  ;;  %630 = vmatmul.msk.f32.vlgmr.msrb.gmra.mxu2 %vm140_vm1, %v298_v12  ;;  %684 = vrcp.f32 %v754_v32  ;;  %v562_v32 = vld [vmem:[%s971_s9 + $0x38] sm:$0xff] }
 0x2a3   :  { %582 = vmatpush.msra.mxu2 %v562_v32 }
 0x2a7   :  { %v683_v13 = vpop.eup %682 }
 0x2a8   :  { %v299_v14 = vmul.f32 %v683_v13, %v675_v59  ;;  %v685_v33 = vpop.eup %684 }
 0x2a9   :  { %v406_v34 = vmul.f32 32.0, %v685_v33  ;;  %vm410_vm4 = vweird.f32 %v685_v33 }
 0x2aa   :  { %631 = vmatmul.msk.f32.gmra.mxu2 %vm140_vm1, %v299_v14 }
 0x2ab   :  { %v407_v35 = vsub.f32 1.0, %v406_v34  ;;  %v560_v34 = vld [vmem:[%s971_s9 + $0x28] sm:$0xff] }
 0x2ad   :  { %v408_v36 = vmul.f32 %v685_v33, %v407_v35 }
 0x2af   :  { %v409_v37 = vadd.f32 %v685_v33, %v408_v36 }
 0x31d   :  { %v230_v18 = vpop.f32.mrf.mxu2 }
 0x31f   :  { %v227_v19 = vpop.f32.mrf.mxu0 }
 0x320   :  { %634 = vmatmul.msk.f32.vlgmr.msrb.gmra.mxu1 %vm140_vm1, %v227_v19 }
 0x325   :  { %v329_v20 = vpop.f32.mrf.mxu2 }
 0x326   :  { %632 = vmatmul.msk.f32.vlgmr.msra.gmra.mxu0 %vm140_vm1, %v329_v20 }
 0x328   :  { %635 = vmatmul.msk.f32.gmra.mxu1 %vm140_vm1, %v230_v18 }
 0x32d   :  { %v332_v21 = vpop.f32.mrf.mxu2 }
 0x32e   :  { %633 = vmatmul.msk.f32.gmra.mxu0 %vm140_vm1, %v332_v21 }
 0x39d   :  { %v389_v22 = vpop.f32.mrf.mxu1 }
 0x3a3   :  { %v360_v23 = vpop.f32.mrf.mxu0 }
 0x3a4   :  { %v390_v24 = vadd.f32 %v389_v22, %v360_v23 }
 0x3a5   :  { %v392_v27 = vpop.f32.mrf.mxu1 }
 0x3a6   :  { %v395_v25 = vadd.f32 %v390_v24, %v834_v4  ;;  %v882_v4 = vsel %vm410_vm4, %v685_v33, %v409_v37  ;;  %v561_v33 = vld [vmem:[%s971_s9 + $0x30] sm:$0xff]  ;;  %v559_v37 = vld [vmem:[%s971_s9 + $0x20] sm:$0xff] }
 0x3a7   :  { %583 = vmatpush.msra.mxu2 %v561_v33 }
 0x3a8   :  { %v399_v26 = vsel %vm61_vm0, %v395_v25, 0.0 }
 0x3a9   :  { %400 = vadd.xlane.f32.xlu0 %v399_v26  ;;  %v518_v26 = vld [vmem:[%s969_s7 + $0x10] sm:$0xff]  ;;  %584 = vmatpush.msra.mxu2 %v560_v34 }
 0x3ab   :  { %v363_v28 = vpop.f32.mrf.mxu0  ;;  %585 = vmatpush.msra.mxu2 %v559_v37 }
 0x3ac   :  { %v393_v29 = vadd.f32 %v392_v27, %v363_v28  ;;  %v517_v27 = vld [vmem:[%s969_s7 + $0x8] sm:$0xff]  ;;  %v516_v28 = vld [vmem:[%s969_s7] sm:$0xff] }
 0x3ae   :  { %v396_v30 = vadd.f32 %v393_v29, %v838_v5 }
 0x3b0   :  { %v402_v31 = vsel %vm61_vm0, %v396_v30, 0.0 }
 0x3b1   :  { %403 = vadd.xlane.f32.xlu1 %v402_v31 }
 0x41c   :  { %v401_v38 = vpop.xlane.xlu0 %400 }
 0x41d   :  { %v412_v39 = vmul.f32 %v882_v4, %v401_v38 }
 0x41f   :  { %v414_v40 = vsub.f32 %v395_v25, %v412_v39  ;;  %v519_v25 = vld [vmem:[%s969_s7 + $0x18] sm:$0xff] }
 0x420   :  { %542 = vmatpush.msrb.mxu3 %v519_v25 }
 0x421   :  { %v416_v41 = vmul.f32 %v414_v40, %v414_v40 }
 0x422   :  { %543 = vmatpush.msrb.mxu3 %v518_v26 }
 0x423   :  { %v418_v5 = vsel %vm61_vm0, %v416_v41, 0.0 }
 0x424   :  { %v404_v42 = vpop.xlane.xlu1 %403  ;;  %419 = vadd.xlane.f32.xlu0 %v418_v5  ;;  %544 = vmatpush.msrb.mxu3 %v517_v27  ;;  %v557_v5 = vld [vmem:[%s971_s9 + $0x10] sm:$0xff] }
 0x425   :  { %v413_v43 = vmul.f32 %v882_v4, %v404_v42 }
 0x426   :  { %545 = vmatpush.msrb.mxu3 %v516_v28 }
 0x427   :  { %v415_v44 = vsub.f32 %v396_v30, %v413_v43 }
 0x429   :  { %v417_v45 = vmul.f32 %v415_v44, %v415_v44 }
 0x42b   :  { %v421_v46 = vsel %vm61_vm0, %v417_v45, 0.0 }
 0x42c   :  { %422 = vadd.xlane.f32.xlu2 %v421_v46 }
 0x497   :  { %v420_v47 = vpop.xlane.xlu0 %419 }
 0x498   :  { %v424_v48 = vmul.f32 %v420_v47, %v882_v4  ;;  %v664_v47 = vld [vmem:[%s967_s5] ss:$0 sm:$0xff] }
 0x49a   :  { %v426_v49 = vadd.f32 1e-05, %v424_v48 }
 0x49c   :  { %686 = vrsqrt.f32 %v426_v49  ;;  %vm434_vm6 = vweird.f32 %v426_v49 }
 0x49f   :  { %v423_v50 = vpop.xlane.xlu2 %422 }
 0x4a0   :  { %v425_v51 = vmul.f32 %v423_v50, %v882_v4 }
 0x4a2   :  { %v687_v52 = vpop.eup %686  ;;  %v427_v53 = vadd.f32 1e-05, %v425_v51  ;;  %v665_v51 = vld [vmem:[%s968_s6] ss:$0 sm:$0xff] }
 0x4a3   :  { %v429_v54 = vmul.f32 %v687_v52, %v426_v49  ;;  %vm435_vm5 = vweird.f32 %v687_v52 }
 0x4a4   :  { %688 = vrsqrt.f32 %v427_v53  ;;  %vm436_vm7 = vmor %vm434_vm6, %vm435_vm5  ;;  %vm444_vm9 = vweird.f32 %v427_v53 }
 0x4a5   :  { %v430_v55 = vmul.f32 %v687_v52, %v429_v54 }
 0x4a7   :  { %v431_v56 = vmul.f32 0.5, %v430_v55 }
 0x4a9   :  { %v432_v57 = vsub.f32 1.5, %v431_v56 }
 0x4aa   :  { %v689_v58 = vpop.eup %688 }
 0x4ab   :  { %v433_v59 = vmul.f32 %v687_v52, %v432_v57  ;;  %v439_v60 = vmul.f32 %v689_v58, %v427_v53  ;;  %vm445_vm8 = vweird.f32 %v689_v58 }
 0x4ac   :  { %vm446_vm10 = vmor %vm444_vm9, %vm445_vm8 }
 0x4ad   :  { %v440_v62 = vmul.f32 %v689_v58, %v439_v60  ;;  %v437_v63 = vsel %vm436_vm7, %v687_v52, %v433_v59 }
 0x4ae   :  { %v448_v0 = vmul.f32 %v437_v63, %v414_v40  ;;  %v558_v40 = vld [vmem:[%s971_s9 + $0x18] sm:$0xff]  ;;  %v666_v63 = vld [vmem:[%s970_s8] ss:$0 sm:$0xff] }
 0x4af   :  { %v441_v2 = vmul.f32 0.5, %v440_v62  ;;  %586 = vmatpush.msra.mxu2 %v558_v40  ;;  %v555_v62 = vld [vmem:[%s971_s9] sm:$0xff] }
 0x4b0   :  { %v453_v3 = vmul.f32 %v662_v61, %v448_v0 }
 0x4b1   :  { %v442_v6 = vsub.f32 1.5, %v441_v2  ;;  %587 = vmatpush.msra.mxu2 %v557_v5 }
 0x4b2   :  { %v458_v7 = vadd.f32 %v663_v1, %v453_v3 }
 0x4b3   :  { %v443_v8 = vmul.f32 %v689_v58, %v442_v6 }
 0x4b4   :  { %v462_v9 = vsel %vm61_vm0, %v458_v7, 0.0 }
 0x4b5   :  { %463 = vadd.xlane.f32.xlu0 %v462_v9  ;;  %v447_v10 = vsel %vm446_vm10, %v689_v58, %v443_v8  ;;  %v667_v8 = vld [vmem:[%s972_s10] ss:$0 sm:$0xff] }
 0x4b6   :  { %v449_v11 = vmul.f32 %v447_v10, %v415_v44 }
 0x4b8   :  { %v454_v12 = vmul.f32 %v662_v61, %v449_v11  ;;  %v556_v61 = vld [vmem:[%s971_s9 + $0x8] sm:$0xff]  ;;  %s755_s9 = smov [#allocation5]  }
 0x4b9   :  { %588 = vmatpush.msra.mxu2 %v556_v61  ;;  %s603_s1 = sshll.u32 %s755_s9, 4  ;;  %s604_s1 = int_to_ptr.vmem [resolvable:$true] %s603_s1 }
 0x4ba   :  { %v459_v13 = vadd.f32 %v663_v1, %v454_v12 }
 0x4bb   :  { %589 = vmatpush.msra.mxu2 %v555_v62 }
 0x4bc   :  { %v465_v14 = vsel %vm61_vm0, %v459_v13, 0.0 }
 0x4bd   :  { %466 = vadd.xlane.f32.xlu0 %v465_v14 }
 0x528   :  { %v464_v15 = vpop.xlane.xlu0 %463 }
 0x529   :  { %v468_v16 = vmul.f32 %v464_v15, %v882_v4 }
 0x52b   :  { %v470_v17 = vsub.f32 %v458_v7, %v468_v16 }
 0x52d   :  { %v472_v18 = vmul.f32 %v470_v17, %v470_v17 }
 0x52f   :  { %v474_v19 = vsel %vm61_vm0, %v472_v18, 0.0 }
 0x530   :  { %475 = vadd.xlane.f32.xlu0 %v474_v19  ;;  %v467_v20 = vpop.xlane.xlu0 %466 }
 0x531   :  { %v469_v21 = vmul.f32 %v467_v20, %v882_v4 }
 0x533   :  { %v471_v22 = vsub.f32 %v459_v13, %v469_v21 }
 0x535   :  { %v473_v23 = vmul.f32 %v471_v22, %v471_v22 }
 0x537   :  { %v477_v24 = vsel %vm61_vm0, %v473_v23, 0.0 }
 0x538   :  { %478 = vadd.xlane.f32.xlu0 %v477_v24 }
 0x5a3   :  { %v476_v29 = vpop.xlane.xlu0 %475 }
 0x5a4   :  { %v480_v30 = vmul.f32 %v476_v29, %v882_v4 }
 0x5a6   :  { %v482_v31 = vadd.f32 1e-05, %v480_v30 }
 0x5a8   :  { %690 = vrsqrt.f32 %v482_v31  ;;  %vm490_vm12 = vweird.f32 %v482_v31 }
 0x5ab   :  { %v479_v35 = vpop.xlane.xlu0 %478 }
 0x5ac   :  { %v481_v36 = vmul.f32 %v479_v35, %v882_v4 }
 0x5ae   :  { %v691_v38 = vpop.eup %690  ;;  %v483_v39 = vadd.f32 1e-05, %v481_v36 }
 0x5af   :  { %v485_v41 = vmul.f32 %v691_v38, %v482_v31  ;;  %vm491_vm11 = vweird.f32 %v691_v38 }
 0x5b0   :  { %692 = vrsqrt.f32 %v483_v39  ;;  %vm492_vm13 = vmor %vm490_vm12, %vm491_vm11  ;;  %vm500_vm15 = vweird.f32 %v483_v39 }
 0x5b1   :  { %v486_v42 = vmul.f32 %v691_v38, %v485_v41 }
 0x5b3   :  { %v487_v4 = vmul.f32 0.5, %v486_v42 }
 0x5b5   :  { %v488_v43 = vsub.f32 1.5, %v487_v4 }
 0x5b6   :  { %v693_v44 = vpop.eup %692 }
 0x5b7   :  { %v489_v45 = vmul.f32 %v691_v38, %v488_v43  ;;  %v495_v46 = vmul.f32 %v693_v44, %v483_v39  ;;  %vm501_vm14 = vweird.f32 %v693_v44 }
 0x5b8   :  { %vm502_vm1 = vmor %vm500_vm15, %vm501_vm14 }
 0x5b9   :  { %v493_v48 = vsel %vm492_vm13, %v691_v38, %v489_v45  ;;  %v496_v49 = vmul.f32 %v693_v44, %v495_v46 }
 0x5ba   :  { %v504_v50 = vmul.f32 %v493_v48, %v470_v17 }
 0x5bb   :  { %v497_v52 = vmul.f32 0.5, %v496_v49 }
 0x5bc   :  { %v509_v53 = vmul.f32 %v664_v47, %v504_v50 }
 0x5bd   :  { %v498_v54 = vsub.f32 1.5, %v497_v52 }
 0x5be   :  { %v514_v55 = vadd.f32 %v665_v51, %v509_v53 }
 0x5bf   :  { %v499_v56 = vmul.f32 %v693_v44, %v498_v54 }
 0x5c0   :  { %636 = vmatmul.msk.f32.vlgmr.msrb.gmra.mxu3 %vm61_vm0, %v514_v55 }
 0x5c1   :  { %v503_v57 = vsel %vm502_vm1, %v693_v44, %v499_v56 }
 0x5c2   :  { %v505_v58 = vmul.f32 %v503_v57, %v471_v22 }
 0x5c4   :  { %v510_v59 = vmul.f32 %v664_v47, %v505_v58 }
 0x5c6   :  { %v515_v60 = vadd.f32 %v665_v51, %v510_v59 }
 0x5c8   :  { %637 = vmatmul.msk.f32.gmra.mxu3 %vm61_vm0, %v515_v60 }
 0x643   :  { %v547_v0 = vpop.f32.mrf.mxu3 }
 0x644   :  { %v548_v1 = vadd.f32 %v666_v63, %v547_v0 }
 0x646   :  { %v553_v2 = vmax.f32 %v548_v1, 0.0 }
 0x648   :  { %638 = vmatmul.msk.f32.vlgmr.msra.gmra.mxu2 %vm567_vm2, %v553_v2 }
 0x64b   :  { %v550_v3 = vpop.f32.mrf.mxu3 }
 0x64c   :  { %v551_v6 = vadd.f32 %v666_v63, %v550_v3 }
 0x64e   :  { %v554_v7 = vmax.f32 %v551_v6, 0.0 }
 0x650   :  { %639 = vmatmul.msk.f32.gmra.mxu2 %vm567_vm2, %v554_v7 }
 0x6cb   :  { %v591_v9 = vpop.f32.mrf.mxu2 }
 0x6cc   :  { %v592_v10 = vadd.f32 %v667_v8, %v591_v9 }
 0x6ce   :  { %597 = vst.msk [vmem:[#allocation5] sm:$0xff] %vm61_vm0, %v592_v10 }
 0x6d3   :  { %v594_v11 = vpop.f32.mrf.mxu2 }
 0x6d4   :  { %v595_v12 = vadd.f32 %v667_v8, %v594_v11 }
 0x6d6   :  { %598 = vst.msk [vmem:[#allocation5 + $0x8] sm:$0xff] %vm61_vm0, %v595_v12 }
 0x6d7   :  { %611 = dma.vmem_to_hbm [thread:$0]  %s604_s1, 256, %s606_s15, [#allocation4], %s747_s22, %s747_s22, %s748_s23  }
 0x6d8   :  { %744 = dma.done.wait [#allocation4], 256  }
 0x6d9   :  { %745 = vsyncadd [#allocation4], 4294967040 }
 0x6da   :  { %616 = vsyncpa [#allocation3], 1 }
 0x6db   :  { %617 = vsyncpa [#allocation4], 1 }

</bundles_post_ra>
